<compile_context>
chip_gen: v6e
topology: v6e:2x2x1
jax: 0.10.0
libtpu: 0.0.40
codegen_flags: <defaults>
</compile_context>

<pallas_src>
import jax
import jax.numpy as jnp
from jax.experimental import pallas as pl
from jax.experimental.pallas import tpu as pltpu


# ---------------------------------------------------------------------------
# Kernel body: pure elementwise activation, computed in f32, cast on store.
# ---------------------------------------------------------------------------
def _make_elementwise_kernel(activation_fn):
    def kernel(x_ref, o_ref):
        # f32 compute keeps the fast VPU/EUP path on v5e (no bf16 units there);
        # on v6e/v7x the DMA saturates first, so the upcast costs ~nothing.
        x = x_ref[...].astype(jnp.float32)
        o_ref[...] = activation_fn(x).astype(o_ref.dtype)

    return kernel


def _silu(x):
    # x * sigmoid(x); exp goes to the EUP, mul/add to the VPU.
    return x * jax.nn.sigmoid(x)


def _sublane_multiple(dtype):
    # dtype-native sublane packing: 8 for 4-byte, 16 for 2-byte, 32 for 1-byte.
    return max(8, 32 // jnp.dtype(dtype).itemsize)


def _round_up(x, m):
    return pl.cdiv(x, m) * m


def _generation_params():
    """(target_block_bytes, vmem_limit_bytes) chosen per TPU generation."""
    try:
        kind = jax.devices()[0].device_kind.lower()
    except Exception:  # pragma: no cover - CPU/interpret fallback
        kind = ""
    if "v7" in kind:
        # 3.2 TB/s HBM makes the ~0.35us per-step overhead expensive; 64 MiB
        # physical VMEM with a 32 MiB scoped default -> raise the limit so
        # 2x(in)+2x(out) 8 MiB blocks fit.
        return 8 << 20, 48 << 20
    if "v5" in kind:
        # 2 MiB blocks already sit at the roofline knee; keep 4 buffered
        # blocks well under the 16 MiB scoped-VMEM default.
        return 2 << 20, None
    # v6e and anything unknown: saturation reached by 2-4 MiB blocks.
    return 4 << 20, None


def _pick_tile(rows, sub, target_bytes, row_bytes):
    """Leading-dim tile: ~target_bytes, sublane-aligned, grid >= 2 when possible."""
    if rows <= sub:
        return max(rows, 1)  # full (small) leading dim -> always a legal block
    tile = max(sub, (target_bytes // row_bytes) // sub * sub)
    # Keep at least 2 grid steps so both TensorCores (v7x megacore) get work.
    half = _round_up(pl.cdiv(rows, 2), sub)
    tile = min(tile, half)
    tile = min(tile, _round_up(rows, sub))
    return tile


def _elementwise_pallas(x, activation_fn, tile_rows, *, vmem_limit,
                        allow_fusion, total_elems):
    rows, cols = x.shape
    itemsize = jnp.dtype(x.dtype).itemsize
    grid = pl.cdiv(rows, tile_rows)

    compiler_kwargs = dict(dimension_semantics=("parallel",))
    if vmem_limit is not None:
        compiler_kwargs["vmem_limit_bytes"] = vmem_limit
    if allow_fusion:
        compiler_kwargs["allow_input_fusion"] = [True]

    return pl.pallas_call(
        _make_elementwise_kernel(activation_fn),
        out_shape=jax.ShapeDtypeStruct((rows, cols), x.dtype),
        grid_spec=pltpu.PrefetchScalarGridSpec(
            num_scalar_prefetch=0,
            grid=(grid,),
            in_specs=[pl.BlockSpec((tile_rows, cols), lambda i: (i, 0))],
            out_specs=pl.BlockSpec((tile_rows, cols), lambda i: (i, 0)),
        ),
        compiler_params=pltpu.CompilerParams(**compiler_kwargs),
        cost_estimate=pl.CostEstimate(
            flops=4 * total_elems,
            transcendentals=total_elems,
            bytes_accessed=2 * total_elems * itemsize,
        ),
    )(x)


def make_sparse_activation(activation_fn=_silu):
    """Build the Pallas equivalent of SparseActivation(activation)."""

    @jax.jit
    def sparse_activation(coords, feats):
        n, c = feats.shape
        dtype = feats.dtype
        itemsize = jnp.dtype(dtype).itemsize
        total = n * c

        # Empty sparse tensor: nothing to do (avoid a zero-size grid).
        if total == 0:
            return coords, feats

        sub = _sublane_multiple(dtype)
        target_block_bytes, vmem_limit = _generation_params()

        if c % 128 == 0:
            # Fast path: feats is already lane-dense; tile (N, C) directly
            # with a ragged (masked) last block.  Zero wrapper-side copies.
            tile_n = _pick_tile(n, sub, target_block_bytes, c * itemsize)
            new_feats = _elementwise_pallas(
                feats, activation_fn, tile_n,
                vmem_limit=vmem_limit, allow_fusion=False, total_elems=total)
            return coords, new_feats

        # Slab path (C not 128-aligned): flatten into a lane-dense [rows, W]
        # slab so stores are unmasked full-lane vst.  Pad only to a multiple
        # of W; the ragged last *block* along rows is masked by Pallas.
        w = min(1024, max(128, (total // (sub * 128)) * 128))
        rows_needed = pl.cdiv(total, w)
        padded_total = rows_needed * w

        flat = feats.reshape(-1)
        if padded_total != total:
            # Zero pad: the activated pad is sliced off below; even a
            # non-finite activation_fn(0) only touches discarded lanes.
            flat = jnp.pad(flat, (0, padded_total - total))
        slab = flat.reshape(rows_needed, w)

        tile_rows = _pick_tile(rows_needed, sub, target_block_bytes,
                               w * itemsize)
        out_slab = _elementwise_pallas(
            slab, activation_fn, tile_rows,
            vmem_limit=vmem_limit, allow_fusion=True, total_elems=total)

        new_feats = out_slab.reshape(-1)[:total].reshape(n, c)
        # SparseTensor.replace(new_feats): coords unchanged, feats swapped.
        return coords, new_feats

    return sparse_activation


# Default module instance: SparseActivation(nn.SiLU()).
sparse_activation = make_sparse_activation(_silu)


if __name__ == "__main__":
    key = jax.random.PRNGKey(0)
    k_feats, k_coords = jax.random.split(key)

    # Small shapes: N sparse points, C channels.  C=32 exercises the slab
    # (unaligned) path; C=128 exercises the direct lane-aligned path.
    N = 64
    coords = jax.random.randint(k_coords, (N, 4), 0, 16, dtype=jnp.int32)

    ok = True
    for C in (32, 128):
        feats = jax.random.normal(k_feats, (N, C), dtype=jnp.float32)
        out_coords, out_feats = sparse_activation(coords, feats)
        jax.block_until_ready(out_feats)

        ref = feats * jax.nn.sigmoid(feats)
        ok &= bool(jnp.allclose(out_feats, ref, atol=1e-5))
        ok &= bool(jnp.array_equal(out_coords, coords))

    assert ok, "mismatch vs reference"
    print("KERNEL_OK")
</pallas_src>

<mosaic_0001>
module attributes {stable_mosaic.version = 11 : i64} {
  func.func @kernel(%arg0: i32, %arg1: memref<8x256xf32, #tpu.memory_space<vmem>>, %arg2: memref<8x256xf32, #tpu.memory_space<vmem>>) attributes {dimension_semantics = [#tpu.dimension_semantics<parallel>], iteration_bounds = array<i64: 1>, scalar_prefetch = 0 : i64, scratch_operands = 0 : i64, tpu.core_type = #tpu.core_type<tc>, window_params = [{transform_indices = @transform_0, window_bounds = array<i64: 8, 256>}, {transform_indices = @transform_1, window_bounds = array<i64: 8, 256>}]} {
    %c0 = arith.constant 0 : index
    %c0_0 = arith.constant 0 : index
    %0 = vector.load %arg1[%c0, %c0_0] : memref<8x256xf32, #tpu.memory_space<vmem>>, vector<8x256xf32>
    %1 = arith.negf %0 : vector<8x256xf32>
    %2 = math.exp %1 : vector<8x256xf32>
    %cst = arith.constant 1.000000e+00 : f32
    %3 = vector.broadcast %cst : f32 to vector<8x256xf32>
    %4 = arith.addf %3, %2 : vector<8x256xf32>
    %5 = arith.divf %3, %4 : vector<8x256xf32>
    %6 = arith.mulf %0, %5 : vector<8x256xf32>
    %c0_1 = arith.constant 0 : index
    %c0_2 = arith.constant 0 : index
    %7 = vector.load %arg2[%c0_1, %c0_2] : memref<8x256xf32, #tpu.memory_space<vmem>>, vector<8x256xf32>
    tpu.vector_store %arg2[%c0_1, %c0_2], %6 {strides = array<i32>} : memref<8x256xf32, #tpu.memory_space<vmem>>, vector<8x256xf32>,
    return
  }
  func.func @transform_0(%arg0: i32) -> (i32, i32) {
    %c0_i32 = arith.constant 0 : i32
    %c0_i32_0 = arith.constant 0 : i32
    return %arg0, %c0_i32 : i32, i32
  }
  func.func @transform_1(%arg0: i32) -> (i32, i32) {
    %c0_i32 = arith.constant 0 : i32
    %c0_i32_0 = arith.constant 0 : i32
    return %arg0, %c0_i32 : i32, i32
  }
}

</mosaic_0001>

<bundles_post_ra>
// kernel: sparse_activation.1
= control target key start
LH: loop header
LB: loop body
LE: loop exit
PB: predicated region body
PF: predicated region fallthrough
CT: control target
= control target key end

     0   :  { %s62_s0 = inlined_call_operand.vmem [shape: f32[8,256], index: 0, kind: input, shape index: {}]   ;;  %s63_s1 = inlined_call_operand.vmem [shape: f32[8,256], index: 1, kind: output, shape index: {}]  }
   0x1   :  { %v8_v0 = vld [vmem:[%s62_s0] sm:$0xff]  ;;  %v9_v1 = vld [vmem:[%s62_s0 + $0x8] sm:$0xff] }
   0x2   :  { %v30_v2 = vmul.f32 -1.442695, %v8_v0  ;;  %v31_v3 = vmul.f32 -1.442695, %v9_v1 }
   0x4   :  { %32 = vpow2.f32 %v30_v2 }
   0x5   :  { %34 = vpow2.f32 %v31_v3 }
  0x11   :  { %v33_v4 = vpop.eup %32 }
  0x12   :  { %v35_v5 = vpop.eup %34  ;;  %v16_v6 = vadd.f32 1.0, %v33_v4 }
  0x13   :  { %v17_v7 = vadd.f32 1.0, %v35_v5 }
  0x14   :  { %36 = vrcp.f32 %v16_v6 }
  0x15   :  { %38 = vrcp.f32 %v17_v7 }
  0x21   :  { %v37_v8 = vpop.eup %36 }
  0x22   :  { %v39_v9 = vpop.eup %38  ;;  %v22_v10 = vmul.f32 %v37_v8, %v8_v0 }
  0x23   :  { %v23_v11 = vmul.f32 %v39_v9, %v9_v1 }
  0x24   :  { %24 = vst [vmem:[%s63_s1] sm:$0xff] %v22_v10 }
  0x25   :  { %25 = vst [vmem:[%s63_s1 + $0x8] sm:$0xff] %v23_v11 }

</bundles_post_ra>
